<compile_context>
chip_gen: v5e
topology: v5e:2x2
jax: 0.10.0
libtpu: 0.0.40
codegen_flags: <defaults>
</compile_context>

<pallas_src>
import functools

import jax
import jax.numpy as jnp
from jax.experimental import pallas as pl
from jax.experimental.pallas import tpu as pltpu


def _relation_head_kernel(code_ref, text_ref,
                          w1a_ref, w1b_ref, w1c_ref, b1_ref,
                          w2_ref, b2_ref,
                          out_ref,
                          code_acc, text_acc,
                          *, seq_len, seq_tile, needs_mask):
    k = pl.program_id(1)            # seq-reduction axis (innermost)
    nk = pl.num_programs(1)

    # --- init accumulators on the first seq tile of this batch tile --------
    @pl.when(k == 0)
    def _init():
        code_acc[...] = jnp.zeros_like(code_acc)
        text_acc[...] = jnp.zeros_like(text_acc)

    code_tile = code_ref[...]        # (bt, tS, H), input dtype
    text_tile = text_ref[...]
    bt = code_tile.shape[0]

    # Token-sum on the MXU: ones-vector contraction over the seq (sublane)
    # axis with f32 accumulation -> no full-tile f32 cast / VPU add tree in
    # the HBM-bound hot loop.
    ones = jnp.ones((bt, 1, seq_tile), dtype=code_tile.dtype)

    def _accumulate(ct, tt):
        code_acc[...] += jnp.einsum(
            "bks,bsh->bkh", ones, ct,
            preferred_element_type=jnp.float32)[:, 0, :]
        text_acc[...] += jnp.einsum(
            "bks,bsh->bkh", ones, tt,
            preferred_element_type=jnp.float32)[:, 0, :]

    if needs_mask:   # static Python branch: only emitted when S % tS != 0
        is_tail = k == nk - 1

        @pl.when(jnp.logical_not(is_tail))
        def _full_tiles():
            _accumulate(code_tile, text_tile)

        @pl.when(is_tail)   # mask exactly the single partial tile
        def _tail_tile():
            pos = k * seq_tile + jax.lax.broadcasted_iota(
                jnp.int32, (1, seq_tile, 1), 1)
            valid = pos < seq_len
            zero = jnp.zeros((), dtype=code_tile.dtype)
            _accumulate(jnp.where(valid, code_tile, zero),
                        jnp.where(valid, text_tile, zero))
    else:
        _accumulate(code_tile, text_tile)

    # --- finalize: pool scale, |diff|, dense+tanh, output layer -------------
    # Runs exactly once per batch tile (last seq step).
    @pl.when(k == nk - 1)
    def _finalize():
        inv_s = jnp.float32(1.0 / seq_len)
        code_pool = code_acc[...] * inv_s            # (bt, H)
        text_pool = text_acc[...] * inv_s            # (bt, H)
        diff = jnp.abs(code_pool - text_pool)        # (bt, H)

        # dropout: identity at inference
        # dense (3H -> H): concat replaced by three accumulated HxH matmuls
        x = (jnp.dot(code_pool, w1a_ref[...], preferred_element_type=jnp.float32)
             + jnp.dot(text_pool, w1b_ref[...], preferred_element_type=jnp.float32)
             + jnp.dot(diff, w1c_ref[...], preferred_element_type=jnp.float32)
             + b1_ref[...])
        x = jnp.tanh(x)                              # (bt, H)

        # dropout: identity at inference
        logits = jnp.dot(x, w2_ref[...],
                         preferred_element_type=jnp.float32) + b2_ref[...]
        out_ref[...] = logits.astype(out_ref.dtype)  # (bt, 2)


def _vmem_capacity_bytes():
    """Physical VMEM of the current TPU generation (fallback: v7x's 64 MiB)."""
    try:
        cap = getattr(pltpu.get_tpu_info(), "vmem_capacity_bytes", None)
        if cap:
            return int(cap)
    except Exception:
        pass
    return 64 << 20


def _pick_batch_tile(batch):
    """Largest sublane-aligned divisor of B (<= 64) so the batch axis can be a
    'parallel' grid axis (v7x megacore); otherwise a single tile of B rows."""
    bt = batch
    for cand in (8, 16, 32, 64):
        if batch > cand and batch % cand == 0:
            bt = cand
    return bt


def relation_classify_head(code_hidden, text_hidden, w1, b1, w2, b2,
                           *, seq_tile=None):
    """code_hidden, text_hidden: (B, S, H).  w1: (3H, H), b1: (H,),
    w2: (H, 2), b2: (2,).  Returns (B, 2) f32 logits (eval mode)."""
    B, S, H = code_hidden.shape
    itemsize = jnp.dtype(code_hidden.dtype).itemsize
    # Packed sublane tile: 8 rows for f32, 16 for bf16/f16, 32 for int8/fp8.
    sub = 8 * max(1, 4 // itemsize)

    bt = _pick_batch_tile(B)
    num_batch_tiles = B // bt

    # --- generation-aware VMEM budget ---------------------------------------
    cap = _vmem_capacity_bytes()
    w_itemsize = jnp.dtype(w1.dtype).itemsize
    weight_bytes = (3 * H * H + H + H * 2 + 2) * w_itemsize   # single-buffered
    acc_bytes = 2 * bt * H * 4
    # ~48 MiB of tile budget on v7x (64 MiB VMEM), ~96 MiB on v5e/v6e (128 MiB).
    tile_budget = int(cap) * 3 // 4 - weight_bytes - acc_bytes

    # --- pick a sublane-aligned seq tile -------------------------------------
    per_seq_row = 2 * 2 * bt * H * itemsize     # 2 inputs x 2 pipeline buffers
    if seq_tile is None:
        ts = tile_budget // max(per_seq_row, 1)
    else:
        ts = int(seq_tile)
    ts = max(1, min(ts, S))
    if ts < S:                                  # full-extent blocks are always legal
        ts = (ts // sub) * sub
        if ts == 0:
            ts = min(sub, S)

    num_seq_tiles = pl.cdiv(S, ts)
    needs_mask = (S % ts) != 0

    # Split dense weight into three (H, H) slices (kills the lane-axis concat):
    #   x = code_pool @ W1a + text_pool @ W1b + |diff| @ W1c + b1
    w1a, w1b, w1c = w1[:H, :], w1[H:2 * H, :], w1[2 * H:, :]
    b1_2d = b1.reshape(1, H)
    b2_2d = b2.reshape(1, 2)

    # --- explicit VMEM limit: double-buffered tiles + resident weights -------
    tile_bytes = bt * ts * H * itemsize
    vmem_limit = 2 * 2 * tile_bytes + weight_bytes + acc_bytes + (4 << 20)
    vmem_limit = int(min(max(vmem_limit, 32 << 20), cap * 7 // 8))

    kernel = functools.partial(_relation_head_kernel,
                               seq_len=S, seq_tile=ts, needs_mask=needs_mask)

    tile_map = lambda b, k: (b, k, 0)
    const_map = lambda b, k: (0, 0)

    def _build(single_buffer_weights):
        if single_buffer_weights:
            def resident_spec(shape):
                # Constant index_map -> block is DMA'd exactly once; a second
                # pipeline buffer is pure VMEM waste.
                return pl.BlockSpec(shape, const_map,
                                    pipeline_mode=pl.Buffered(buffer_count=1))
        else:
            def resident_spec(shape):
                return pl.BlockSpec(shape, const_map)

        return pl.pallas_call(
            kernel,
            out_shape=jax.ShapeDtypeStruct((B, 2), jnp.float32),
            grid_spec=pltpu.PrefetchScalarGridSpec(
                num_scalar_prefetch=0,
                grid=(num_batch_tiles, num_seq_tiles),
                in_specs=[
                    pl.BlockSpec((bt, ts, H), tile_map),   # code seq tiles
                    pl.BlockSpec((bt, ts, H), tile_map),   # text seq tiles
                    resident_spec((H, H)),                 # W1a
                    resident_spec((H, H)),                 # W1b
                    resident_spec((H, H)),                 # W1c
                    resident_spec((1, H)),                 # b1
                    resident_spec((H, 2)),                 # W2
                    resident_spec((1, 2)),                 # b2
                ],
                out_specs=pl.BlockSpec((bt, 2), lambda b, k: (b, 0)),
                scratch_shapes=[
                    pltpu.VMEM((bt, H), jnp.float32),      # code sum acc
                    pltpu.VMEM((bt, H), jnp.float32),      # text sum acc
                ],
            ),
            compiler_params=pltpu.CompilerParams(
                # batch tiles are independent (v7x megacore); seq is a reduction
                dimension_semantics=("parallel", "arbitrary"),
                vmem_limit_bytes=vmem_limit,
            ),
        )

    args = (code_hidden, text_hidden, w1a, w1b, w1c, b1_2d, w2, b2_2d)
    try:
        return _build(True)(*args)
    except Exception:
        # Fallback if this JAX/Mosaic build rejects single-buffered resident
        # blocks (pl.Buffered(1)); identical semantics, default buffering.
        return _build(False)(*args)


def _reference(code_hidden, text_hidden, w1, b1, w2, b2):
    """Plain-JAX reference mirroring the PyTorch forward (eval mode)."""
    code_pool = jnp.mean(code_hidden.astype(jnp.float32), axis=1)
    text_pool = jnp.mean(text_hidden.astype(jnp.float32), axis=1)
    diff = jnp.abs(code_pool - text_pool)
    cat = jnp.concatenate([code_pool, text_pool, diff], axis=1)
    x = jnp.tanh(cat @ w1 + b1)
    return x @ w2 + b2


if __name__ == "__main__":
    B, H = 2, 32  # batch, hidden_size (toy shapes)

    key = jax.random.PRNGKey(0)
    (k_code, k_text, k_w1, k_b1, k_w2, k_b2,
     k_code2, k_text2) = jax.random.split(key, 8)

    # PyTorch Linear(in, out) weight is (out, in); we store the transpose.
    w1 = 0.02 * jax.random.normal(k_w1, (3 * H, H), dtype=jnp.float32)
    b1 = 0.01 * jax.random.normal(k_b1, (H,), dtype=jnp.float32)
    w2 = 0.02 * jax.random.normal(k_w2, (H, 2), dtype=jnp.float32)
    b2 = 0.01 * jax.random.normal(k_b2, (2,), dtype=jnp.float32)

    # Case 1: S divisible by the seq tile -> pure streaming reduction (2 steps).
    S1 = 16
    code1 = jax.random.normal(k_code, (B, S1, H), dtype=jnp.float32)
    text1 = jax.random.normal(k_text, (B, S1, H), dtype=jnp.float32)
    out1 = jax.block_until_ready(
        relation_classify_head(code1, text1, w1, b1, w2, b2, seq_tile=8))
    ref1 = _reference(code1, text1, w1, b1, w2, b2)
    assert out1.shape == (B, 2), out1.shape
    assert jnp.allclose(out1, ref1, atol=1e-5, rtol=1e-5), (out1, ref1)

    # Case 2: ragged S -> exercises the pl.when-gated tail mask (last tile only).
    S2 = 20
    code2 = jax.random.normal(k_code2, (B, S2, H), dtype=jnp.float32)
    text2 = jax.random.normal(k_text2, (B, S2, H), dtype=jnp.float32)
    out2 = jax.block_until_ready(
        relation_classify_head(code2, text2, w1, b1, w2, b2, seq_tile=8))
    ref2 = _reference(code2, text2, w1, b1, w2, b2)
    assert out2.shape == (B, 2), out2.shape
    assert jnp.allclose(out2, ref2, atol=1e-5, rtol=1e-5), (out2, ref2)

    print("KERNEL_OK")
</pallas_src>

<mosaic_0001>
module attributes {stable_mosaic.version = 11 : i64} {
  func.func @_relation_head_kernel(%arg0: i32, %arg1: i32, %arg2: memref<2x8x32xf32, #tpu.memory_space<vmem>>, %arg3: memref<2x8x32xf32, #tpu.memory_space<vmem>>, %arg4: memref<32x32xf32, #tpu.memory_space<vmem>>, %arg5: memref<32x32xf32, #tpu.memory_space<vmem>>, %arg6: memref<32x32xf32, #tpu.memory_space<vmem>>, %arg7: memref<1x32xf32, #tpu.memory_space<vmem>>, %arg8: memref<32x2xf32, #tpu.memory_space<vmem>>, %arg9: memref<1x2xf32, #tpu.memory_space<vmem>>, %arg10: memref<2x2xf32, #tpu.memory_space<vmem>>, %arg11: memref<2x32xf32, #tpu.memory_space<vmem>>, %arg12: memref<2x32xf32, #tpu.memory_space<vmem>>) attributes {dimension_semantics = [#tpu.dimension_semantics<parallel>, #tpu.dimension_semantics<arbitrary>], iteration_bounds = array<i64: 1, 2>, scalar_prefetch = 0 : i64, scratch_operands = 2 : i64, tpu.core_type = #tpu.core_type<tc>, window_params = [{transform_indices = @transform_0, window_bounds = array<i64: 2, 8, 32>}, {transform_indices = @transform_1, window_bounds = array<i64: 2, 8, 32>}, {pipeline_mode = #tpu.pipeline_mode<synchronous>, transform_indices = @transform_2, window_bounds = array<i64: 32, 32>}, {pipeline_mode = #tpu.pipeline_mode<synchronous>, transform_indices = @transform_3, window_bounds = array<i64: 32, 32>}, {pipeline_mode = #tpu.pipeline_mode<synchronous>, transform_indices = @transform_4, window_bounds = array<i64: 32, 32>}, {pipeline_mode = #tpu.pipeline_mode<synchronous>, transform_indices = @transform_5, window_bounds = array<i64: 1, 32>}, {pipeline_mode = #tpu.pipeline_mode<synchronous>, transform_indices = @transform_6, window_bounds = array<i64: 32, 2>}, {pipeline_mode = #tpu.pipeline_mode<synchronous>, transform_indices = @transform_7, window_bounds = array<i64: 1, 2>}, {transform_indices = @transform_8, window_bounds = array<i64: 2, 2>}]} {
    %c0_i32 = arith.constant 0 : i32
    %0 = arith.cmpi eq, %arg1, %c0_i32 : i32
    %1 = arith.extui %0 : i1 to i32
    %c0_i32_0 = arith.constant 0 : i32
    %2 = arith.cmpi ne, %1, %c0_i32_0 : i32
    scf.if %2 {
      %cst_17 = arith.constant 0.000000e+00 : f32
      %19 = vector.broadcast %cst_17 : f32 to vector<2x32xf32>
      %c0_18 = arith.constant 0 : index
      %c0_19 = arith.constant 0 : index
      %20 = vector.load %arg11[%c0_18, %c0_19] : memref<2x32xf32, #tpu.memory_space<vmem>>, vector<2x32xf32>
      tpu.vector_store %arg11[%c0_18, %c0_19], %19 {strides = array<i32>} : memref<2x32xf32, #tpu.memory_space<vmem>>, vector<2x32xf32>,
      %cst_20 = arith.constant 0.000000e+00 : f32
      %21 = vector.broadcast %cst_20 : f32 to vector<2x32xf32>
      %c0_21 = arith.constant 0 : index
      %c0_22 = arith.constant 0 : index
      %22 = vector.load %arg12[%c0_21, %c0_22] : memref<2x32xf32, #tpu.memory_space<vmem>>, vector<2x32xf32>
      tpu.vector_store %arg12[%c0_21, %c0_22], %21 {strides = array<i32>} : memref<2x32xf32, #tpu.memory_space<vmem>>, vector<2x32xf32>,
    } else {
    }
    %c0 = arith.constant 0 : index
    %c0_1 = arith.constant 0 : index
    %c0_2 = arith.constant 0 : index
    %3 = vector.load %arg2[%c0, %c0_1, %c0_2] : memref<2x8x32xf32, #tpu.memory_space<vmem>>, vector<2x8x32xf32>
    %c0_3 = arith.constant 0 : index
    %c0_4 = arith.constant 0 : index
    %c0_5 = arith.constant 0 : index
    %4 = vector.load %arg3[%c0_3, %c0_4, %c0_5] : memref<2x8x32xf32, #tpu.memory_space<vmem>>, vector<2x8x32xf32>
    %cst = arith.constant 1.000000e+00 : f32
    %5 = vector.broadcast %cst : f32 to vector<2x1x8xf32>
    %c0_6 = arith.constant 0 : index
    %c0_7 = arith.constant 0 : index
    %6 = vector.load %arg11[%c0_6, %c0_7] : memref<2x32xf32, #tpu.memory_space<vmem>>, vector<2x32xf32>
    "tpu.trace_start"() <{level = 10 : i32, message = "bks,bsh->bkh"}> : () -> ()
    %cst_8 = arith.constant dense<0.000000e+00> : vector<2x1x32xf32>
    %7 = tpu.matmul %5, %3, %cst_8 {dimension_numbers = #tpu.dot_dimension_numbers<[2], [1], [1], [2], [0, 0, 0, 1, 1, 2], [0], [0]>} : vector<2x1x8xf32>, vector<2x8x32xf32>, vector<2x1x32xf32> -> vector<2x1x32xf32>
    "tpu.trace_stop"() : () -> ()
    %8 = vector.shape_cast %7 : vector<2x1x32xf32> to vector<2x32xf32>
    %9 = arith.addf %6, %8 : vector<2x32xf32>
    %c0_9 = arith.constant 0 : index
    %c0_10 = arith.constant 0 : index
    %10 = vector.load %arg11[%c0_9, %c0_10] : memref<2x32xf32, #tpu.memory_space<vmem>>, vector<2x32xf32>
    tpu.vector_store %arg11[%c0_9, %c0_10], %9 {strides = array<i32>} : memref<2x32xf32, #tpu.memory_space<vmem>>, vector<2x32xf32>,
    %c0_11 = arith.constant 0 : index
    %c0_12 = arith.constant 0 : index
    %11 = vector.load %arg12[%c0_11, %c0_12] : memref<2x32xf32, #tpu.memory_space<vmem>>, vector<2x32xf32>
    "tpu.trace_start"() <{level = 10 : i32, message = "bks,bsh->bkh"}> : () -> ()
    %cst_13 = arith.constant dense<0.000000e+00> : vector<2x1x32xf32>
    %12 = tpu.matmul %5, %4, %cst_13 {dimension_numbers = #tpu.dot_dimension_numbers<[2], [1], [1], [2], [0, 0, 0, 1, 1, 2], [0], [0]>} : vector<2x1x8xf32>, vector<2x8x32xf32>, vector<2x1x32xf32> -> vector<2x1x32xf32>
    "tpu.trace_stop"() : () -> ()
    %13 = vector.shape_cast %12 : vector<2x1x32xf32> to vector<2x32xf32>
    %14 = arith.addf %11, %13 : vector<2x32xf32>
    %c0_14 = arith.constant 0 : index
    %c0_15 = arith.constant 0 : index
    %15 = vector.load %arg12[%c0_14, %c0_15] : memref<2x32xf32, #tpu.memory_space<vmem>>, vector<2x32xf32>
    tpu.vector_store %arg12[%c0_14, %c0_15], %14 {strides = array<i32>} : memref<2x32xf32, #tpu.memory_space<vmem>>, vector<2x32xf32>,
    %c1_i32 = arith.constant 1 : i32
    %16 = arith.cmpi eq, %arg1, %c1_i32 : i32
    %17 = arith.extui %16 : i1 to i32
    %c0_i32_16 = arith.constant 0 : i32
    %18 = arith.cmpi ne, %17, %c0_i32_16 : i32
    scf.if %18 {
      %c0_17 = arith.constant 0 : index
      %c0_18 = arith.constant 0 : index
      %19 = vector.load %arg11[%c0_17, %c0_18] : memref<2x32xf32, #tpu.memory_space<vmem>>, vector<2x32xf32>
      %cst_19 = arith.constant 6.250000e-02 : f32
      %20 = vector.broadcast %cst_19 : f32 to vector<2x32xf32>
      %21 = arith.mulf %19, %20 : vector<2x32xf32>
      %c0_20 = arith.constant 0 : index
      %c0_21 = arith.constant 0 : index
      %22 = vector.load %arg12[%c0_20, %c0_21] : memref<2x32xf32, #tpu.memory_space<vmem>>, vector<2x32xf32>
      %cst_22 = arith.constant 6.250000e-02 : f32
      %23 = vector.broadcast %cst_22 : f32 to vector<2x32xf32>
      %24 = arith.mulf %22, %23 : vector<2x32xf32>
      %25 = arith.subf %21, %24 : vector<2x32xf32>
      %26 = math.absf %25 : vector<2x32xf32>
      %c0_23 = arith.constant 0 : index
      %c0_24 = arith.constant 0 : index
      %27 = vector.load %arg4[%c0_23, %c0_24] : memref<32x32xf32, #tpu.memory_space<vmem>>, vector<32x32xf32>
      %cst_25 = arith.constant dense<0.000000e+00> : vector<2x32xf32>
      %28 = tpu.matmul %21, %27, %cst_25 {dimension_numbers = #tpu.dot_dimension_numbers<[1], [0], [0], [1], [0, 0, 1, 1], [], []>} : vector<2x32xf32>, vector<32x32xf32>, vector<2x32xf32> -> vector<2x32xf32>
      %c0_26 = arith.constant 0 : index
      %c0_27 = arith.constant 0 : index
      %29 = vector.load %arg5[%c0_26, %c0_27] : memref<32x32xf32, #tpu.memory_space<vmem>>, vector<32x32xf32>
      %cst_28 = arith.constant dense<0.000000e+00> : vector<2x32xf32>
      %30 = tpu.matmul %24, %29, %cst_28 {dimension_numbers = #tpu.dot_dimension_numbers<[1], [0], [0], [1], [0, 0, 1, 1], [], []>} : vector<2x32xf32>, vector<32x32xf32>, vector<2x32xf32> -> vector<2x32xf32>
      %31 = arith.addf %28, %30 : vector<2x32xf32>
      %c0_29 = arith.constant 0 : index
      %c0_30 = arith.constant 0 : index
      %32 = vector.load %arg6[%c0_29, %c0_30] : memref<32x32xf32, #tpu.memory_space<vmem>>, vector<32x32xf32>
      %cst_31 = arith.constant dense<0.000000e+00> : vector<2x32xf32>
      %33 = tpu.matmul %26, %32, %cst_31 {dimension_numbers = #tpu.dot_dimension_numbers<[1], [0], [0], [1], [0, 0, 1, 1], [], []>} : vector<2x32xf32>, vector<32x32xf32>, vector<2x32xf32> -> vector<2x32xf32>
      %34 = arith.addf %31, %33 : vector<2x32xf32>
      %c0_32 = arith.constant 0 : index
      %c0_33 = arith.constant 0 : index
      %35 = vector.load %arg7[%c0_32, %c0_33] : memref<1x32xf32, #tpu.memory_space<vmem>>, vector<1x32xf32>
      %36 = vector.broadcast %35 : vector<1x32xf32> to vector<2x32xf32>
      %37 = arith.addf %34, %36 : vector<2x32xf32>
      %38 = math.tanh %37 : vector<2x32xf32>
      %c0_34 = arith.constant 0 : index
      %c0_35 = arith.constant 0 : index
      %39 = vector.load %arg8[%c0_34, %c0_35] : memref<32x2xf32, #tpu.memory_space<vmem>>, vector<32x2xf32>
      %cst_36 = arith.constant dense<0.000000e+00> : vector<2x2xf32>
      %40 = tpu.matmul %38, %39, %cst_36 {dimension_numbers = #tpu.dot_dimension_numbers<[1], [0], [0], [1], [0, 0, 1, 1], [], []>} : vector<2x32xf32>, vector<32x2xf32>, vector<2x2xf32> -> vector<2x2xf32>
      %c0_37 = arith.constant 0 : index
      %c0_38 = arith.constant 0 : index
      %41 = vector.load %arg9[%c0_37, %c0_38] : memref<1x2xf32, #tpu.memory_space<vmem>>, vector<1x2xf32>
      %42 = vector.broadcast %41 : vector<1x2xf32> to vector<2x2xf32>
      %43 = arith.addf %40, %42 : vector<2x2xf32>
      %c0_39 = arith.constant 0 : index
      %c0_40 = arith.constant 0 : index
      %44 = vector.load %arg10[%c0_39, %c0_40] : memref<2x2xf32, #tpu.memory_space<vmem>>, vector<2x2xf32>
      tpu.vector_store %arg10[%c0_39, %c0_40], %43 {strides = array<i32>} : memref<2x2xf32, #tpu.memory_space<vmem>>, vector<2x2xf32>,
    } else {
    }
    return
  }
  func.func @transform_0(%arg0: i32, %arg1: i32) -> (i32, i32, i32) {
    %c0_i32 = arith.constant 0 : i32
    %c0_i32_0 = arith.constant 0 : i32
    return %arg0, %arg1, %c0_i32 : i32, i32, i32
  }
  func.func @transform_1(%arg0: i32, %arg1: i32) -> (i32, i32, i32) {
    %c0_i32 = arith.constant 0 : i32
    %c0_i32_0 = arith.constant 0 : i32
    return %arg0, %arg1, %c0_i32 : i32, i32, i32
  }
  func.func @transform_2(%arg0: i32, %arg1: i32) -> (i32, i32) {
    %c0_i32 = arith.constant 0 : i32
    %c0_i32_0 = arith.constant 0 : i32
    %c0_i32_1 = arith.constant 0 : i32
    return %c0_i32, %c0_i32_0 : i32, i32
  }
  func.func @transform_3(%arg0: i32, %arg1: i32) -> (i32, i32) {
    %c0_i32 = arith.constant 0 : i32
    %c0_i32_0 = arith.constant 0 : i32
    %c0_i32_1 = arith.constant 0 : i32
    return %c0_i32, %c0_i32_0 : i32, i32
  }
  func.func @transform_4(%arg0: i32, %arg1: i32) -> (i32, i32) {
    %c0_i32 = arith.constant 0 : i32
    %c0_i32_0 = arith.constant 0 : i32
    %c0_i32_1 = arith.constant 0 : i32
    return %c0_i32, %c0_i32_0 : i32, i32
  }
  func.func @transform_5(%arg0: i32, %arg1: i32) -> (i32, i32) {
    %c0_i32 = arith.constant 0 : i32
    %c0_i32_0 = arith.constant 0 : i32
    %c0_i32_1 = arith.constant 0 : i32
    return %c0_i32, %c0_i32_0 : i32, i32
  }
  func.func @transform_6(%arg0: i32, %arg1: i32) -> (i32, i32) {
    %c0_i32 = arith.constant 0 : i32
    %c0_i32_0 = arith.constant 0 : i32
    %c0_i32_1 = arith.constant 0 : i32
    return %c0_i32, %c0_i32_0 : i32, i32
  }
  func.func @transform_7(%arg0: i32, %arg1: i32) -> (i32, i32) {
    %c0_i32 = arith.constant 0 : i32
    %c0_i32_0 = arith.constant 0 : i32
    %c0_i32_1 = arith.constant 0 : i32
    return %c0_i32, %c0_i32_0 : i32, i32
  }
  func.func @transform_8(%arg0: i32, %arg1: i32) -> (i32, i32) {
    %c0_i32 = arith.constant 0 : i32
    %c0_i32_0 = arith.constant 0 : i32
    return %arg0, %c0_i32 : i32, i32
  }
}

module attributes {stable_mosaic.version = 11 : i64} {
  func.func @_relation_head_kernel(%arg0: i32, %arg1: i32, %arg2: memref<2x8x32xf32, #tpu.memory_space<vmem>>, %arg3: memref<2x8x32xf32, #tpu.memory_space<vmem>>, %arg4: memref<32x32xf32, #tpu.memory_space<vmem>>, %arg5: memref<32x32xf32, #tpu.memory_space<vmem>>, %arg6: memref<32x32xf32, #tpu.memory_space<vmem>>, %arg7: memref<1x32xf32, #tpu.memory_space<vmem>>, %arg8: memref<32x2xf32, #tpu.memory_space<vmem>>, %arg9: memref<1x2xf32, #tpu.memory_space<vmem>>, %arg10: memref<2x2xf32, #tpu.memory_space<vmem>>, %arg11: memref<2x32xf32, #tpu.memory_space<vmem>>, %arg12: memref<2x32xf32, #tpu.memory_space<vmem>>) attributes {dimension_semantics = [#tpu.dimension_semantics<parallel>, #tpu.dimension_semantics<arbitrary>], iteration_bounds = array<i64: 1, 2>, scalar_prefetch = 0 : i64, scratch_operands = 2 : i64, tpu.core_type = #tpu.core_type<tc>, window_params = [{transform_indices = @transform_0, window_bounds = array<i64: 2, 8, 32>}, {transform_indices = @transform_1, window_bounds = array<i64: 2, 8, 32>}, {pipeline_mode = #tpu.pipeline_mode<synchronous>, transform_indices = @transform_2, window_bounds = array<i64: 32, 32>}, {pipeline_mode = #tpu.pipeline_mode<synchronous>, transform_indices = @transform_3, window_bounds = array<i64: 32, 32>}, {pipeline_mode = #tpu.pipeline_mode<synchronous>, transform_indices = @transform_4, window_bounds = array<i64: 32, 32>}, {pipeline_mode = #tpu.pipeline_mode<synchronous>, transform_indices = @transform_5, window_bounds = array<i64: 1, 32>}, {pipeline_mode = #tpu.pipeline_mode<synchronous>, transform_indices = @transform_6, window_bounds = array<i64: 32, 2>}, {pipeline_mode = #tpu.pipeline_mode<synchronous>, transform_indices = @transform_7, window_bounds = array<i64: 1, 2>}, {transform_indices = @transform_8, window_bounds = array<i64: 2, 2>}]} {
    %c0_i32 = arith.constant 0 : i32
    %0 = arith.cmpi eq, %arg1, %c0_i32 : i32
    %1 = arith.extui %0 : i1 to i32
    %c0_i32_0 = arith.constant 0 : i32
    %2 = arith.cmpi ne, %1, %c0_i32_0 : i32
    scf.if %2 {
      %cst_17 = arith.constant 0.000000e+00 : f32
      %19 = vector.broadcast %cst_17 : f32 to vector<2x32xf32>
      %c0_18 = arith.constant 0 : index
      %c0_19 = arith.constant 0 : index
      %20 = vector.load %arg11[%c0_18, %c0_19] : memref<2x32xf32, #tpu.memory_space<vmem>>, vector<2x32xf32>
      tpu.vector_store %arg11[%c0_18, %c0_19], %19 {strides = array<i32>} : memref<2x32xf32, #tpu.memory_space<vmem>>, vector<2x32xf32>,
      %cst_20 = arith.constant 0.000000e+00 : f32
      %21 = vector.broadcast %cst_20 : f32 to vector<2x32xf32>
      %c0_21 = arith.constant 0 : index
      %c0_22 = arith.constant 0 : index
      %22 = vector.load %arg12[%c0_21, %c0_22] : memref<2x32xf32, #tpu.memory_space<vmem>>, vector<2x32xf32>
      tpu.vector_store %arg12[%c0_21, %c0_22], %21 {strides = array<i32>} : memref<2x32xf32, #tpu.memory_space<vmem>>, vector<2x32xf32>,
    } else {
    }
    %c0 = arith.constant 0 : index
    %c0_1 = arith.constant 0 : index
    %c0_2 = arith.constant 0 : index
    %3 = vector.load %arg2[%c0, %c0_1, %c0_2] : memref<2x8x32xf32, #tpu.memory_space<vmem>>, vector<2x8x32xf32>
    %c0_3 = arith.constant 0 : index
    %c0_4 = arith.constant 0 : index
    %c0_5 = arith.constant 0 : index
    %4 = vector.load %arg3[%c0_3, %c0_4, %c0_5] : memref<2x8x32xf32, #tpu.memory_space<vmem>>, vector<2x8x32xf32>
    %cst = arith.constant 1.000000e+00 : f32
    %5 = vector.broadcast %cst : f32 to vector<2x1x8xf32>
    %c0_6 = arith.constant 0 : index
    %c0_7 = arith.constant 0 : index
    %6 = vector.load %arg11[%c0_6, %c0_7] : memref<2x32xf32, #tpu.memory_space<vmem>>, vector<2x32xf32>
    "tpu.trace_start"() <{level = 10 : i32, message = "bks,bsh->bkh"}> : () -> ()
    %cst_8 = arith.constant dense<0.000000e+00> : vector<2x1x32xf32>
    %7 = tpu.matmul %5, %3, %cst_8 {dimension_numbers = #tpu.dot_dimension_numbers<[2], [1], [1], [2], [0, 0, 0, 1, 1, 2], [0], [0]>} : vector<2x1x8xf32>, vector<2x8x32xf32>, vector<2x1x32xf32> -> vector<2x1x32xf32>
    "tpu.trace_stop"() : () -> ()
    %8 = vector.shape_cast %7 : vector<2x1x32xf32> to vector<2x32xf32>
    %9 = arith.addf %6, %8 : vector<2x32xf32>
    %c0_9 = arith.constant 0 : index
    %c0_10 = arith.constant 0 : index
    %10 = vector.load %arg11[%c0_9, %c0_10] : memref<2x32xf32, #tpu.memory_space<vmem>>, vector<2x32xf32>
    tpu.vector_store %arg11[%c0_9, %c0_10], %9 {strides = array<i32>} : memref<2x32xf32, #tpu.memory_space<vmem>>, vector<2x32xf32>,
    %c0_11 = arith.constant 0 : index
    %c0_12 = arith.constant 0 : index
    %11 = vector.load %arg12[%c0_11, %c0_12] : memref<2x32xf32, #tpu.memory_space<vmem>>, vector<2x32xf32>
    "tpu.trace_start"() <{level = 10 : i32, message = "bks,bsh->bkh"}> : () -> ()
    %cst_13 = arith.constant dense<0.000000e+00> : vector<2x1x32xf32>
    %12 = tpu.matmul %5, %4, %cst_13 {dimension_numbers = #tpu.dot_dimension_numbers<[2], [1], [1], [2], [0, 0, 0, 1, 1, 2], [0], [0]>} : vector<2x1x8xf32>, vector<2x8x32xf32>, vector<2x1x32xf32> -> vector<2x1x32xf32>
    "tpu.trace_stop"() : () -> ()
    %13 = vector.shape_cast %12 : vector<2x1x32xf32> to vector<2x32xf32>
    %14 = arith.addf %11, %13 : vector<2x32xf32>
    %c0_14 = arith.constant 0 : index
    %c0_15 = arith.constant 0 : index
    %15 = vector.load %arg12[%c0_14, %c0_15] : memref<2x32xf32, #tpu.memory_space<vmem>>, vector<2x32xf32>
    tpu.vector_store %arg12[%c0_14, %c0_15], %14 {strides = array<i32>} : memref<2x32xf32, #tpu.memory_space<vmem>>, vector<2x32xf32>,
    %c1_i32 = arith.constant 1 : i32
    %16 = arith.cmpi eq, %arg1, %c1_i32 : i32
    %17 = arith.extui %16 : i1 to i32
    %c0_i32_16 = arith.constant 0 : i32
    %18 = arith.cmpi ne, %17, %c0_i32_16 : i32
    scf.if %18 {
      %c0_17 = arith.constant 0 : index
      %c0_18 = arith.constant 0 : index
      %19 = vector.load %arg11[%c0_17, %c0_18] : memref<2x32xf32, #tpu.memory_space<vmem>>, vector<2x32xf32>
      %cst_19 = arith.constant 6.250000e-02 : f32
      %20 = vector.broadcast %cst_19 : f32 to vector<2x32xf32>
      %21 = arith.mulf %19, %20 : vector<2x32xf32>
      %c0_20 = arith.constant 0 : index
      %c0_21 = arith.constant 0 : index
      %22 = vector.load %arg12[%c0_20, %c0_21] : memref<2x32xf32, #tpu.memory_space<vmem>>, vector<2x32xf32>
      %cst_22 = arith.constant 6.250000e-02 : f32
      %23 = vector.broadcast %cst_22 : f32 to vector<2x32xf32>
      %24 = arith.mulf %22, %23 : vector<2x32xf32>
      %25 = arith.subf %21, %24 : vector<2x32xf32>
      %26 = math.absf %25 : vector<2x32xf32>
      %c0_23 = arith.constant 0 : index
      %c0_24 = arith.constant 0 : index
      %27 = vector.load %arg4[%c0_23, %c0_24] : memref<32x32xf32, #tpu.memory_space<vmem>>, vector<32x32xf32>
      %cst_25 = arith.constant dense<0.000000e+00> : vector<2x32xf32>
      %28 = tpu.matmul %21, %27, %cst_25 {dimension_numbers = #tpu.dot_dimension_numbers<[1], [0], [0], [1], [0, 0, 1, 1], [], []>} : vector<2x32xf32>, vector<32x32xf32>, vector<2x32xf32> -> vector<2x32xf32>
      %c0_26 = arith.constant 0 : index
      %c0_27 = arith.constant 0 : index
      %29 = vector.load %arg5[%c0_26, %c0_27] : memref<32x32xf32, #tpu.memory_space<vmem>>, vector<32x32xf32>
      %cst_28 = arith.constant dense<0.000000e+00> : vector<2x32xf32>
      %30 = tpu.matmul %24, %29, %cst_28 {dimension_numbers = #tpu.dot_dimension_numbers<[1], [0], [0], [1], [0, 0, 1, 1], [], []>} : vector<2x32xf32>, vector<32x32xf32>, vector<2x32xf32> -> vector<2x32xf32>
      %31 = arith.addf %28, %30 : vector<2x32xf32>
      %c0_29 = arith.constant 0 : index
      %c0_30 = arith.constant 0 : index
      %32 = vector.load %arg6[%c0_29, %c0_30] : memref<32x32xf32, #tpu.memory_space<vmem>>, vector<32x32xf32>
      %cst_31 = arith.constant dense<0.000000e+00> : vector<2x32xf32>
      %33 = tpu.matmul %26, %32, %cst_31 {dimension_numbers = #tpu.dot_dimension_numbers<[1], [0], [0], [1], [0, 0, 1, 1], [], []>} : vector<2x32xf32>, vector<32x32xf32>, vector<2x32xf32> -> vector<2x32xf32>
      %34 = arith.addf %31, %33 : vector<2x32xf32>
      %c0_32 = arith.constant 0 : index
      %c0_33 = arith.constant 0 : index
      %35 = vector.load %arg7[%c0_32, %c0_33] : memref<1x32xf32, #tpu.memory_space<vmem>>, vector<1x32xf32>
      %36 = vector.broadcast %35 : vector<1x32xf32> to vector<2x32xf32>
      %37 = arith.addf %34, %36 : vector<2x32xf32>
      %38 = math.tanh %37 : vector<2x32xf32>
      %c0_34 = arith.constant 0 : index
      %c0_35 = arith.constant 0 : index
      %39 = vector.load %arg8[%c0_34, %c0_35] : memref<32x2xf32, #tpu.memory_space<vmem>>, vector<32x2xf32>
      %cst_36 = arith.constant dense<0.000000e+00> : vector<2x2xf32>
      %40 = tpu.matmul %38, %39, %cst_36 {dimension_numbers = #tpu.dot_dimension_numbers<[1], [0], [0], [1], [0, 0, 1, 1], [], []>} : vector<2x32xf32>, vector<32x2xf32>, vector<2x2xf32> -> vector<2x2xf32>
      %c0_37 = arith.constant 0 : index
      %c0_38 = arith.constant 0 : index
      %41 = vector.load %arg9[%c0_37, %c0_38] : memref<1x2xf32, #tpu.memory_space<vmem>>, vector<1x2xf32>
      %42 = vector.broadcast %41 : vector<1x2xf32> to vector<2x2xf32>
      %43 = arith.addf %40, %42 : vector<2x2xf32>
      %c0_39 = arith.constant 0 : index
      %c0_40 = arith.constant 0 : index
      %44 = vector.load %arg10[%c0_39, %c0_40] : memref<2x2xf32, #tpu.memory_space<vmem>>, vector<2x2xf32>
      tpu.vector_store %arg10[%c0_39, %c0_40], %43 {strides = array<i32>} : memref<2x2xf32, #tpu.memory_space<vmem>>, vector<2x2xf32>,
    } else {
    }
    return
  }
  func.func @transform_0(%arg0: i32, %arg1: i32) -> (i32, i32, i32) {
    %c0_i32 = arith.constant 0 : i32
    %c0_i32_0 = arith.constant 0 : i32
    return %arg0, %arg1, %c0_i32 : i32, i32, i32
  }
  func.func @transform_1(%arg0: i32, %arg1: i32) -> (i32, i32, i32) {
    %c0_i32 = arith.constant 0 : i32
    %c0_i32_0 = arith.constant 0 : i32
    return %arg0, %arg1, %c0_i32 : i32, i32, i32
  }
  func.func @transform_2(%arg0: i32, %arg1: i32) -> (i32, i32) {
    %c0_i32 = arith.constant 0 : i32
    %c0_i32_0 = arith.constant 0 : i32
    %c0_i32_1 = arith.constant 0 : i32
    return %c0_i32, %c0_i32_0 : i32, i32
  }
  func.func @transform_3(%arg0: i32, %arg1: i32) -> (i32, i32) {
    %c0_i32 = arith.constant 0 : i32
    %c0_i32_0 = arith.constant 0 : i32
    %c0_i32_1 = arith.constant 0 : i32
    return %c0_i32, %c0_i32_0 : i32, i32
  }
  func.func @transform_4(%arg0: i32, %arg1: i32) -> (i32, i32) {
    %c0_i32 = arith.constant 0 : i32
    %c0_i32_0 = arith.constant 0 : i32
    %c0_i32_1 = arith.constant 0 : i32
    return %c0_i32, %c0_i32_0 : i32, i32
  }
  func.func @transform_5(%arg0: i32, %arg1: i32) -> (i32, i32) {
    %c0_i32 = arith.constant 0 : i32
    %c0_i32_0 = arith.constant 0 : i32
    %c0_i32_1 = arith.constant 0 : i32
    return %c0_i32, %c0_i32_0 : i32, i32
  }
  func.func @transform_6(%arg0: i32, %arg1: i32) -> (i32, i32) {
    %c0_i32 = arith.constant 0 : i32
    %c0_i32_0 = arith.constant 0 : i32
    %c0_i32_1 = arith.constant 0 : i32
    return %c0_i32, %c0_i32_0 : i32, i32
  }
  func.func @transform_7(%arg0: i32, %arg1: i32) -> (i32, i32) {
    %c0_i32 = arith.constant 0 : i32
    %c0_i32_0 = arith.constant 0 : i32
    %c0_i32_1 = arith.constant 0 : i32
    return %c0_i32, %c0_i32_0 : i32, i32
  }
  func.func @transform_8(%arg0: i32, %arg1: i32) -> (i32, i32) {
    %c0_i32 = arith.constant 0 : i32
    %c0_i32_0 = arith.constant 0 : i32
    return %arg0, %c0_i32 : i32, i32
  }
}

</mosaic_0001>

<bundles_post_ra>
// kernel: tpu_custom_call.1
= control target key start
LH: loop header
LB: loop body
LE: loop exit
PB: predicated region body
PF: predicated region fallthrough
CT: control target
= control target key end

     0   :  { %s1378_s0 = inlined_call_operand.vmem [shape: f32[2,16,32], index: 0, kind: input, shape index: {}]   ;;  %s1379_s1 = inlined_call_operand.hbm [shape: f32[2,16,32], index: 1, kind: input, shape index: {}]   ;;  %s1380_s2 = inlined_call_operand.hbm [shape: f32[32,32], index: 2, kind: input, shape index: {}]   ;;  %s1381_s3 = inlined_call_operand.hbm [shape: f32[32,32], index: 3, kind: input, shape index: {}]   ;;  %s1382_s4 = inlined_call_operand.hbm [shape: f32[32,32], index: 4, kind: input, shape index: {}]   ;;  %s1383_s5 = inlined_call_operand.vmem [shape: f32[1,32], index: 5, kind: input, shape index: {}]   ;;  %s1384_s6 = inlined_call_operand.vmem [shape: f32[32,2], index: 6, kind: input, shape index: {}]   ;;  %s1385_s7 = inlined_call_operand.vmem [shape: f32[1,2], index: 7, kind: input, shape index: {}]   ;;  %s1386_s8 = inlined_call_operand.hbm [shape: f32[2,2], index: 8, kind: output, shape index: {}]  }
   0x1   :  { %1389 = sst [smem:[#allocation19_spill]] %s1380_s2 }
   0x2   :  { %1390 = sst [smem:[#allocation20_spill]] %s1381_s3 }
   0x3   :  { %13 = vsyncpa [#allocation6], 0 }
   0x4   :  { %15 = vsyncpa [#allocation6 + $0x1], 0 }
   0x5   :  { %16 = vsyncpa [#allocation9], 0 }
   0x6   :  { %17 = vsyncpa [#allocation12], 0 }
   0x7   :  { %18 = vsyncpa [#allocation7], 0  ;;  %s1214_s27 = smov 0   ;;  %s1216_s28 = smov 0  }
   0x8   :  { %s1218_s29 = smov 0   ;;  %s1220_s30 = smov 0  }
   0x9   :  { %s1222_s9 = smov 0   ;;  %s1224_s10 = smov 0  }
   0xa LB: > { %s1387_s11 = sadd.s32 4294967295, %s1156_s10   ;;  %s33_s12 = sadd.s32 1, %s1152_s9  ;;  %s1156_s10 = sphi %s1224_s10, %s24_s10   ;;  %s1152_s9 = sphi %s1222_s9, %s1405_s9   ;;  %s1148_s30 = sphi %s1220_s30, %s1404_s30   ;;  %s1144_s29 = sphi %s1218_s29, %s1403_s29   ;;  %s1140_s28 = sphi %s1216_s28, %s1402_s28   ;;  %s1136_s27 = sphi %s1214_s27, %s1401_s27  }
   0xb   : > { %p34_p0 = scmp.ge.s32.totalorder %s33_s12, 2  ;;  %s45_s13 = sadd.s32 1, %s1144_s29 }
   0xc   : > { %p52_p1 = scmp.ne.s32.totalorder %s1144_s29, %s1140_s28  ;;  %p53_p2 = scmp.eq.s32.totalorder %s1156_s10, 0 }
   0xd   : > { %s1407_s12 = smov (%p34_p0, %s33_s12), 0  ;;  %p86_p4 = scmp.ne.s32.totalorder %s1140_s28, %s1136_s27 }
   0xe   : > { %1391 = sst [smem:[#allocation18_spill]] %s1407_s12  ;;  %p1250_p3 = por %p53_p2, %p52_p1 }
   0xf   : > { %s41_s15 = ssub.s32 %s1152_s9, %s1407_s12  ;;  %p1259_p5 = scmp.eq.s32.totalorder %s1387_s11, 0 }
  0x10   : > { %p43_p6 = scmp.eq.s32.totalorder %s41_s15, 0  ;;  %p820_p7 = scmp.ge.s32.totalorder %s1156_s10, 1 }
  0x11   : > { %p1266_p8 = por %p1259_p5, %p86_p4  ;;  %p249_p9 = scmp.lt.s32.totalorder %s1156_s10, 3 }
  0x12   : > { %s1272_s18 = scalar_select %p43_p6, %s1144_s29, %s45_s13  }
  0x13   : > { %p1274_p10 = pnand %p820_p7, %p249_p9  ;;  %s1396_s2 = sld [smem:[#allocation19_spill]] }
  0x14   : > { %s1158_s23 = smov [#allocation8]   ;;  %s1398_s3 = sld [smem:[#allocation20_spill]] }
  0x15   : > { %p867_p11 = pneg %p1274_p10  ;;  %s262_s24 = sshll.u32 %s1158_s23, 4  ;;  %s263_s24 = int_to_ptr.vmem [resolvable:$true] %s262_s24 }
  0x16   : > { %s1159_s15 = smov 128   ;;  %s1160_s20 = smov 8  }
  0x17   : > { %p1285_p12 = pnand %p867_p11, %p1259_p5  ;;  %s288_s11 = sshll.u32 %s1382_s4, 4  ;;  %s289_s11 = int_to_ptr.hbm [resolvable:$true] %s288_s11 }
  0x18   : > { %s1162_s26 = smov [#allocation11]   ;;  %p824_p13 = scmp.ge.s32.totalorder %s1156_s10, 2 }
  0x19   : > { %s260_s22 = sshll.u32 %s1396_s2, 4  ;;  %s1161_s2 = smov [#allocation10]   ;;  %s261_s22 = int_to_ptr.hbm [resolvable:$true] %s260_s22 }
  0x1a   : > { %s274_s13 = sshll.u32 %s1398_s3, 4  ;;  %s276_s12 = sshll.u32 %s1161_s2, 4  ;;  %s275_s13 = int_to_ptr.hbm [resolvable:$true] %s274_s13  ;;  %s277_s12 = int_to_ptr.vmem [resolvable:$true] %s276_s12 }
  0x1b   : > { %870 = dma.hbm_to_vmem [thread:$0]  (!%p1285_p12), %s261_s22, 512, %s263_s24, [#allocation9], %s1159_s15, %s1159_s15, %s1160_s20  }
  0x1c   : > { %873 = dma.hbm_to_vmem [thread:$0]  (!%p1285_p12), %s275_s13, 512, %s277_s12, [#allocation9], %s1159_s15, %s1159_s15, %s1160_s20  }
  0x1d   : > { %s290_s27 = sshll.u32 %s1162_s26, 4  ;;  %309 = sbr.rel (%p824_p13) target bundleno = 47 (0x2f), region = 40  ;;  %s291_s27 = int_to_ptr.vmem [resolvable:$true] %s290_s27 }
  0x1e   : > { %876 = dma.hbm_to_vmem [thread:$0]  (!%p1285_p12), %s289_s11, 512, %s291_s27, [#allocation12], %s1159_s15, %s1159_s15, %s1160_s20  }
  0x22   : > { %312 = sbr.rel (!%p1250_p3) target bundleno = 40 (0x28), region = 44  ;;  %s314_s22 = sand.u32 (%p1250_p3), 1, %s1144_s29  }
  0x23   : > { %s826_s24 = sshll.u32 (%p1250_p3), %s1152_s9, 3  ;;  %s825_s2 = sshll.u32 (%p1250_p3), %s314_s22, 4 }
  0x24   : > { %s321_s12 = scalar_lea.vmem (%p1250_p3), %s1378_s0, %s826_s24  ;;  %s316_s13 = scalar_lea.vmem (%p1250_p3), [#allocation4], %s825_s2 }
  0x25   : > { %v352_v0 = vld [vmem:[%s321_s12] sm:$0xff] (%p1250_p3)  ;;  %v354_v1 = vld [vmem:[%s321_s12 + $0x10] sm:$0xff] (%p1250_p3) }
  0x26   : > { %353 = vst [vmem:[%s316_s13] sm:$0xff] (%p1250_p3), %v352_v0 }
  0x27   : > { %355 = vst [vmem:[%s316_s13 + $0x8] sm:$0xff] %v354_v1 }
  0x28 PF: > { %s362_s11 = sand.u32 1, %s1144_s29   ;;  %s828_s25 = sshll.u32 %s1152_s9, 3 }
  0x29   : > { %s827_s15 = sshll.u32 %s362_s11, 4  ;;  %s373_s27 = scalar_lea.hbm %s1379_s1, %s828_s25 }
  0x2a   : > { %s374_s22 = sshll.u32 %s373_s27, 4  ;;  %s366_s3 = scalar_lea.vmem [#allocation5], %s827_s15  ;;  %s375_s22 = int_to_ptr.hbm [resolvable:$true] %s374_s22 }
  0x2b   : > { %s376_s21 = sshll.u32 %s366_s3, 4  ;;  %s363_s24 = scalar_lea.sflag [#allocation6], %s362_s11  ;;  %s377_s21 = int_to_ptr.vmem [resolvable:$true] %s376_s21 }
  0x2c   : > { %s1163_s2 = smov 256   ;;  %s1164_s23 = smov 128  }
  0x2d   : > { %s1165_s12 = smov 8  }
  0x2e   : > { %855 = dma.hbm_to_vmem [thread:$0]  (%p1250_p3), %s375_s22, 256, %s377_s21, %s363_s24, %s1163_s2, %s1164_s23, %s1165_s12  }
  0x2f PF: > { %388 = sbr.rel (%p1274_p10) target bundleno = 504 (0x1f8), region = 86  ;;  %s391_s13 = sand.u32 (!%p1274_p10), 1, %s1140_s28  }
  0x30   : > { %s830_s20 = sshll.u32 (!%p1274_p10), %s391_s13, 4  ;;  %s398_s26 = scalar_lea.sflag (!%p1274_p10), [#allocation6], %s391_s13 }
  0x31   : > { %s393_s25 = scalar_lea.vmem (!%p1274_p10), [#allocation4], %s830_s20  ;;  %s401_s15 = scalar_lea.vmem (!%p1274_p10), [#allocation5], %s830_s20 }
  0x34   : > { %1119 = dma.done.wait (%p1266_p8), %s398_s26, 256  }
  0x35   : > { %1121 = vsyncadd (%p1266_p8), %s398_s26, 4294967040 }
  0x36   : > { %1123 = dma.done.wait (%p1259_p5), [#allocation9], 1024  }
  0x37   : > { %1125 = vsyncadd (%p1259_p5), [#allocation9], 4294966272 }
  0x38   : > { %1127 = dma.done.wait (%p1259_p5), [#allocation12], 512  }
  0x39   : > { %1129 = vsyncadd (%p1259_p5), [#allocation12], 4294966784  ;;  %p835_p0 = scmp.ne.s32.totalorder %s1148_s30, 0 }
  0x3b   : > { %454 = sbr.rel (%p835_p0) target bundleno = 67 (0x43), region = 110 }
  0x40   : > { %vm455_vm0 = vcmask 254976   ;;  %v1166_v2 = vmov 0.0  }
  0x41   : > { %456 = vst.msk [vmem:[#allocation2] sm:$0x3] %vm455_vm0, %v1166_v2 }
  0x42   : > { %457 = vst.msk [vmem:[#allocation3] sm:$0x3] %vm455_vm0, %v1166_v2 }
  0x43 PF: > { %v461_v3 = vld [vmem:[%s401_s15 + $0x8] sm:$0xff]  ;;  %vm463_vm1 = vcmask 64512   ;;  %v460_v4 = vld [vmem:[%s401_s15] sm:$0xff]  ;;  %v1167_v7 = vmov 1.0   ;;  %vm510_vm2 = vcmask 1041409   ;;  %vm514_vm3 = vcmask 254976  }
  0x44   : > { %v459_v5 = vld [vmem:[%s393_s25 + $0x8] sm:$0xff]  ;;  %552 = vmatpush.msra.mxu3 %v461_v3  ;;  %532 = vmatpush.msra.mxu2 %v460_v4  ;;  %v458_v6 = vld [vmem:[%s393_s25] sm:$0xff]  ;;  %p840_p1 = scmp.ne.s32.totalorder %s1148_s30, 1 }
  0x45   : > { %839 = vmatmul.msk.f32.vlgmr.msra.gmra.mxu3 %vm463_vm1, %v1167_v7  ;;  %838 = vmatmul.msk.f32.vlgmr.msra.gmra.mxu2 %vm463_vm1, %v1167_v7 }
  0x46   : > { %502 = vmatpush.msra.mxu1 %v459_v5  ;;  %482 = vmatpush.msra.mxu0 %v458_v6 }
  0x47   : > { %837 = vmatmul.msk.f32.vlgmr.msra.gmra.mxu1 %vm463_vm1, %v1167_v7  ;;  %836 = vmatmul.msk.f32.vlgmr.msra.gmra.mxu0 %vm463_vm1, %v1167_v7 }
  0x48   : > { %v462_v11 = vld [vmem:[#allocation2] sm:$0x3] }
  0x49   : > { %v516_v17 = vld [vmem:[#allocation3] sm:$0x3] }
  0xc4   : > { %v504_v8 = vpop.f32.mrf.mxu1  ;;  %v484_v9 = vpop.f32.mrf.mxu0 }
  0xc5   : > { %v509_v10 = vrot.slane %v504_v8, 7 }
  0xc7   : > { %v511_v12 = vsel %vm510_vm2, %v509_v10, %v484_v9 }
  0xc8   : > { %v554_v13 = vpop.f32.mrf.mxu3  ;;  %v513_v14 = vadd.f32 %v511_v12, %v462_v11  ;;  %v534_v15 = vpop.f32.mrf.mxu2 }
  0xc9   : > { %v559_v16 = vrot.slane %v554_v13, 7 }
  0xca   : > { %515 = vst.msk [vmem:[#allocation2] sm:$0x3] %vm514_vm3, %v513_v14  ;;  %567 = sbr.rel (%p840_p1) target bundleno = 498 (0x1f2), region = 114 }
  0xcb   : > { %v560_v18 = vsel %vm510_vm2, %v559_v16, %v534_v15 }
  0xcc   : > { %v562_v19 = vadd.f32 %v560_v18, %v516_v17 }
  0xce   : > { %563 = vst.msk [vmem:[#allocation3] sm:$0x3] %vm514_vm3, %v562_v19 }
  0xcf   : > { %v632_v20 = vld [vmem:[#allocation11 + $0x18] sm:$0xff]  ;;  %v631_v21 = vld [vmem:[#allocation11 + $0x10] sm:$0xff]  ;;  %v630_v25 = vld [vmem:[#allocation11 + $0x8] sm:$0xff]  ;;  %vm582_vm4 = vcmask 261120   ;;  %vm694_vm5 = vcmask 9216  }
  0xd0   : > { %v581_v22 = vld [vmem:[#allocation10 + $0x18] sm:$0xff]  ;;  %648 = vmatpush.msra.mxu2 %v632_v20  ;;  %v580_v24 = vld [vmem:[#allocation10 + $0x10] sm:$0xff]  ;;  %v579_v30 = vld [vmem:[#allocation10 + $0x8] sm:$0xff] }
  0xd1   : > { %598 = vmatpush.msra.mxu0 %v581_v22  ;;  %v577_v23 = vld [vmem:[#allocation8 + $0x18] sm:$0xff]  ;;  %v576_v26 = vld [vmem:[#allocation8 + $0x10] sm:$0xff]  ;;  %v575_v31 = vld [vmem:[#allocation8 + $0x8] sm:$0xff] }
  0xd2   : > { %621 = vmatpush.msra.mxu1 %v577_v23  ;;  %v568_v27 = vld [vmem:[#allocation2] sm:$0x3]  ;;  %649 = vmatpush.msra.mxu2 %v631_v21  ;;  %v629_v32 = vld [vmem:[#allocation11] sm:$0xff]  ;;  %v666_v38 = vld [vmem:[%s1384_s6 + $0x18] sm:$0xff] }
  0xd3   : > { %599 = vmatpush.msra.mxu0 %v580_v24  ;;  %v569_v28 = vmul.f32 0.0625, %v568_v27  ;;  %v578_v34 = vld [vmem:[#allocation10] sm:$0xff]  ;;  %686 = vmatpush.msra.mxu3 %v666_v38  ;;  %v665_v39 = vld [vmem:[%s1384_s6 + $0x10] sm:$0xff]  ;;  %v944_v45 = vld [vmem:[%s1383_s5] ss:$0 sm:$0xff] }
  0xd4   : > { %622 = vmatpush.msra.mxu1 %v576_v26  ;;  %650 = vmatpush.msra.mxu2 %v630_v25  ;;  %v574_v35 = vld [vmem:[#allocation8] sm:$0xff]  ;;  %v945_v50 = vld [vmem:[%s1385_s7] ss:$0 sm:$0xff] }
  0xd5   : > { %v570_v29 = vld [vmem:[#allocation3] sm:$0x3]  ;;  %600 = vmatpush.msra.mxu0 %v579_v30  ;;  %v664_v40 = vld [vmem:[%s1384_s6 + $0x8] sm:$0xff]  ;;  %687 = vmatpush.msra.mxu3 %v665_v39 }
  0xd6   : > { %v571_v33 = vmul.f32 0.0625, %v570_v29  ;;  %623 = vmatpush.msra.mxu1 %v575_v31  ;;  %651 = vmatpush.msra.mxu2 %v629_v32  ;;  %v663_v41 = vld [vmem:[%s1384_s6] sm:$0xff] }
  0xd7   : > { %601 = vmatpush.msra.mxu0 %v578_v34  ;;  %688 = vmatpush.msra.mxu3 %v664_v40 }
  0xd8   : > { %v572_v36 = vsub.f32 %v569_v28, %v571_v33  ;;  %624 = vmatpush.msra.mxu1 %v574_v35  ;;  %841 = vmatmul.msk.f32.vlgmr.msra.gmra.mxu0 %vm582_vm4, %v571_v33 }
  0xd9   : > { %842 = vmatmul.msk.f32.vlgmr.msra.gmra.mxu1 %vm582_vm4, %v569_v28  ;;  %689 = vmatpush.msra.mxu3 %v663_v41 }
  0xda   : > { %v573_v37 = vand.u32 2147483647, %v572_v36 }
  0xdc   : > { %843 = vmatmul.msk.f32.vlgmr.msra.gmra.mxu2 %vm582_vm4, %v573_v37 }
 0x155   : > { %v603_v42 = vpop.f32.mrf.mxu0 }
 0x156   : > { %v626_v43 = vpop.f32.mrf.mxu1 }
 0x157   : > { %v627_v44 = vadd.f32 %v626_v43, %v603_v42 }
 0x15f   : > { %v653_v46 = vpop.f32.mrf.mxu2 }
 0x160   : > { %v656_v47 = vadd.f32 %v653_v46, %v627_v44 }
 0x162   : > { %v661_v48 = vadd.f32 %v944_v45, %v656_v47 }
 0x164   : > { %946 = vtanh.f32 %v661_v48 }
 0x16a   : > { %v947_v49 = vpop.eup %946 }
 0x16b   : > { %844 = vmatmul.msk.f32.vlgmr.msra.gmra.mxu3 %vm582_vm4, %v947_v49 }
 0x1ee   : > { %v691_v51 = vpop.f32.mrf.mxu3 }
 0x1ef   : > { %v692_v52 = vadd.f32 %v945_v50, %v691_v51 }
 0x1f1   : > { %695 = vst.msk [vmem:[#allocation13] sm:$0x3] %vm694_vm5, %v692_v52 }
 0x1f2 PF: > { %s1399_s23 = sadd.s32 4294967295, %s1156_s10   ;;  %s706_s20 = sshll.u32 %s1386_s8, 4  ;;  %s707_s20 = int_to_ptr.hbm [resolvable:$true] %s706_s20 }
 0x1f3   : > { %p883_p2 = scmp.eq.s32.totalorder %s1399_s23, 1  ;;  %s1168_s25 = smov [#allocation13]  }
 0x1f4   : > { %s704_s26 = sshll.u32 %s1168_s25, 4  ;;  %s705_s26 = int_to_ptr.vmem [resolvable:$true] %s704_s26 }
 0x1f5   : > { %864 = dma.vmem_to_hbm [thread:$0]  (%p883_p2), %s705_s26, 32, %s707_s20, [#allocation7]  }
 0x1f6   : > { %1131 = dma.done.wait (%p883_p2), [#allocation7], 32  }
 0x1f7   : > { %1133 = vsyncadd (%p883_p2), [#allocation7], 4294967264 }
 0x1f8 PF: > { %s24_s10 = sadd.s32 1, %s1156_s10   ;;  %s1400_s15 = sld [smem:[#allocation18_spill]] }
 0x1f9   : > { %p21_p3 = scmp.ge.s32.totalorder %s24_s10, 4   ;;  %s1401_s27 = smov %s1140_s28 }
 0x1fa   : > { %s1402_s28 = smov %s1144_s29  ;;  %s1403_s29 = smov %s1272_s18 }
 0x1fb   : > { %s1404_s30 = smov %s1152_s9  ;;  %23 = sbr.rel (!%p21_p3) target bundleno = 10 (0xa), region = 156 }
 0x1fe   : > { %s1405_s9 = smov %s1400_s15 }
 0x200   :  { %720 = vsyncpa [#allocation6], 1 }
 0x201   :  { %722 = vsyncpa [#allocation6 + $0x1], 1 }
 0x202   :  { %723 = vsyncpa [#allocation9], 1 }
 0x203   :  { %724 = vsyncpa [#allocation12], 1 }
 0x204   :  { %725 = vsyncpa [#allocation7], 1 }
 0x205   :  { %727 = vsyncpa [#allocation7 + $0x1], 1 }

// kernel: tpu_custom_call.1
= control target key start
LH: loop header
LB: loop body
LE: loop exit
PB: predicated region body
PF: predicated region fallthrough
CT: control target
= control target key end

     0   :  { %s1378_s0 = inlined_call_operand.vmem [shape: f32[2,16,32], index: 0, kind: input, shape index: {}]   ;;  %s1379_s1 = inlined_call_operand.hbm [shape: f32[2,16,32], index: 1, kind: input, shape index: {}]   ;;  %s1380_s2 = inlined_call_operand.hbm [shape: f32[32,32], index: 2, kind: input, shape index: {}]   ;;  %s1381_s3 = inlined_call_operand.hbm [shape: f32[32,32], index: 3, kind: input, shape index: {}]   ;;  %s1382_s4 = inlined_call_operand.hbm [shape: f32[32,32], index: 4, kind: input, shape index: {}]   ;;  %s1383_s5 = inlined_call_operand.vmem [shape: f32[1,32], index: 5, kind: input, shape index: {}]   ;;  %s1384_s6 = inlined_call_operand.vmem [shape: f32[32,2], index: 6, kind: input, shape index: {}]   ;;  %s1385_s7 = inlined_call_operand.vmem [shape: f32[1,2], index: 7, kind: input, shape index: {}]   ;;  %s1386_s8 = inlined_call_operand.hbm [shape: f32[2,2], index: 8, kind: output, shape index: {}]  }
   0x1   :  { %1389 = sst [smem:[#allocation19_spill]] %s1380_s2 }
   0x2   :  { %1390 = sst [smem:[#allocation20_spill]] %s1381_s3 }
   0x3   :  { %13 = vsyncpa [#allocation6], 0 }
   0x4   :  { %15 = vsyncpa [#allocation6 + $0x1], 0 }
   0x5   :  { %16 = vsyncpa [#allocation9], 0 }
   0x6   :  { %17 = vsyncpa [#allocation12], 0 }
   0x7   :  { %18 = vsyncpa [#allocation7], 0  ;;  %s1214_s27 = smov 0   ;;  %s1216_s28 = smov 0  }
   0x8   :  { %s1218_s29 = smov 0   ;;  %s1220_s30 = smov 0  }
   0x9   :  { %s1222_s9 = smov 0   ;;  %s1224_s10 = smov 0  }
   0xa LB: > { %s1387_s11 = sadd.s32 4294967295, %s1156_s10   ;;  %s33_s12 = sadd.s32 1, %s1152_s9  ;;  %s1156_s10 = sphi %s1224_s10, %s24_s10   ;;  %s1152_s9 = sphi %s1222_s9, %s1405_s9   ;;  %s1148_s30 = sphi %s1220_s30, %s1404_s30   ;;  %s1144_s29 = sphi %s1218_s29, %s1403_s29   ;;  %s1140_s28 = sphi %s1216_s28, %s1402_s28   ;;  %s1136_s27 = sphi %s1214_s27, %s1401_s27  }
   0xb   : > { %p34_p0 = scmp.ge.s32.totalorder %s33_s12, 2  ;;  %s45_s13 = sadd.s32 1, %s1144_s29 }
   0xc   : > { %p52_p1 = scmp.ne.s32.totalorder %s1144_s29, %s1140_s28  ;;  %p53_p2 = scmp.eq.s32.totalorder %s1156_s10, 0 }
   0xd   : > { %s1407_s12 = smov (%p34_p0, %s33_s12), 0  ;;  %p86_p4 = scmp.ne.s32.totalorder %s1140_s28, %s1136_s27 }
   0xe   : > { %1391 = sst [smem:[#allocation18_spill]] %s1407_s12  ;;  %p1250_p3 = por %p53_p2, %p52_p1 }
   0xf   : > { %s41_s15 = ssub.s32 %s1152_s9, %s1407_s12  ;;  %p1259_p5 = scmp.eq.s32.totalorder %s1387_s11, 0 }
  0x10   : > { %p43_p6 = scmp.eq.s32.totalorder %s41_s15, 0  ;;  %p820_p7 = scmp.ge.s32.totalorder %s1156_s10, 1 }
  0x11   : > { %p1266_p8 = por %p1259_p5, %p86_p4  ;;  %p249_p9 = scmp.lt.s32.totalorder %s1156_s10, 3 }
  0x12   : > { %s1272_s18 = scalar_select %p43_p6, %s1144_s29, %s45_s13  }
  0x13   : > { %p1274_p10 = pnand %p820_p7, %p249_p9  ;;  %s1396_s2 = sld [smem:[#allocation19_spill]] }
  0x14   : > { %s1158_s23 = smov [#allocation8]   ;;  %s1398_s3 = sld [smem:[#allocation20_spill]] }
  0x15   : > { %p867_p11 = pneg %p1274_p10  ;;  %s262_s24 = sshll.u32 %s1158_s23, 4  ;;  %s263_s24 = int_to_ptr.vmem [resolvable:$true] %s262_s24 }
  0x16   : > { %s1159_s15 = smov 128   ;;  %s1160_s20 = smov 8  }
  0x17   : > { %p1285_p12 = pnand %p867_p11, %p1259_p5  ;;  %s288_s11 = sshll.u32 %s1382_s4, 4  ;;  %s289_s11 = int_to_ptr.hbm [resolvable:$true] %s288_s11 }
  0x18   : > { %s1162_s26 = smov [#allocation11]   ;;  %p824_p13 = scmp.ge.s32.totalorder %s1156_s10, 2 }
  0x19   : > { %s260_s22 = sshll.u32 %s1396_s2, 4  ;;  %s1161_s2 = smov [#allocation10]   ;;  %s261_s22 = int_to_ptr.hbm [resolvable:$true] %s260_s22 }
  0x1a   : > { %s274_s13 = sshll.u32 %s1398_s3, 4  ;;  %s276_s12 = sshll.u32 %s1161_s2, 4  ;;  %s275_s13 = int_to_ptr.hbm [resolvable:$true] %s274_s13  ;;  %s277_s12 = int_to_ptr.vmem [resolvable:$true] %s276_s12 }
  0x1b   : > { %870 = dma.hbm_to_vmem [thread:$0]  (!%p1285_p12), %s261_s22, 512, %s263_s24, [#allocation9], %s1159_s15, %s1159_s15, %s1160_s20  }
  0x1c   : > { %873 = dma.hbm_to_vmem [thread:$0]  (!%p1285_p12), %s275_s13, 512, %s277_s12, [#allocation9], %s1159_s15, %s1159_s15, %s1160_s20  }
  0x1d   : > { %s290_s27 = sshll.u32 %s1162_s26, 4  ;;  %309 = sbr.rel (%p824_p13) target bundleno = 47 (0x2f), region = 40  ;;  %s291_s27 = int_to_ptr.vmem [resolvable:$true] %s290_s27 }
  0x1e   : > { %876 = dma.hbm_to_vmem [thread:$0]  (!%p1285_p12), %s289_s11, 512, %s291_s27, [#allocation12], %s1159_s15, %s1159_s15, %s1160_s20  }
  0x22   : > { %312 = sbr.rel (!%p1250_p3) target bundleno = 40 (0x28), region = 44  ;;  %s314_s22 = sand.u32 (%p1250_p3), 1, %s1144_s29  }
  0x23   : > { %s826_s24 = sshll.u32 (%p1250_p3), %s1152_s9, 3  ;;  %s825_s2 = sshll.u32 (%p1250_p3), %s314_s22, 4 }
  0x24   : > { %s321_s12 = scalar_lea.vmem (%p1250_p3), %s1378_s0, %s826_s24  ;;  %s316_s13 = scalar_lea.vmem (%p1250_p3), [#allocation4], %s825_s2 }
  0x25   : > { %v352_v0 = vld [vmem:[%s321_s12] sm:$0xff] (%p1250_p3)  ;;  %v354_v1 = vld [vmem:[%s321_s12 + $0x10] sm:$0xff] (%p1250_p3) }
  0x26   : > { %353 = vst [vmem:[%s316_s13] sm:$0xff] (%p1250_p3), %v352_v0 }
  0x27   : > { %355 = vst [vmem:[%s316_s13 + $0x8] sm:$0xff] %v354_v1 }
  0x28 PF: > { %s362_s11 = sand.u32 1, %s1144_s29   ;;  %s828_s25 = sshll.u32 %s1152_s9, 3 }
  0x29   : > { %s827_s15 = sshll.u32 %s362_s11, 4  ;;  %s373_s27 = scalar_lea.hbm %s1379_s1, %s828_s25 }
  0x2a   : > { %s374_s22 = sshll.u32 %s373_s27, 4  ;;  %s366_s3 = scalar_lea.vmem [#allocation5], %s827_s15  ;;  %s375_s22 = int_to_ptr.hbm [resolvable:$true] %s374_s22 }
  0x2b   : > { %s376_s21 = sshll.u32 %s366_s3, 4  ;;  %s363_s24 = scalar_lea.sflag [#allocation6], %s362_s11  ;;  %s377_s21 = int_to_ptr.vmem [resolvable:$true] %s376_s21 }
  0x2c   : > { %s1163_s2 = smov 256   ;;  %s1164_s23 = smov 128  }
  0x2d   : > { %s1165_s12 = smov 8  }
  0x2e   : > { %855 = dma.hbm_to_vmem [thread:$0]  (%p1250_p3), %s375_s22, 256, %s377_s21, %s363_s24, %s1163_s2, %s1164_s23, %s1165_s12  }
  0x2f PF: > { %388 = sbr.rel (%p1274_p10) target bundleno = 504 (0x1f8), region = 86  ;;  %s391_s13 = sand.u32 (!%p1274_p10), 1, %s1140_s28  }
  0x30   : > { %s830_s20 = sshll.u32 (!%p1274_p10), %s391_s13, 4  ;;  %s398_s26 = scalar_lea.sflag (!%p1274_p10), [#allocation6], %s391_s13 }
  0x31   : > { %s393_s25 = scalar_lea.vmem (!%p1274_p10), [#allocation4], %s830_s20  ;;  %s401_s15 = scalar_lea.vmem (!%p1274_p10), [#allocation5], %s830_s20 }
  0x34   : > { %1119 = dma.done.wait (%p1266_p8), %s398_s26, 256  }
  0x35   : > { %1121 = vsyncadd (%p1266_p8), %s398_s26, 4294967040 }
  0x36   : > { %1123 = dma.done.wait (%p1259_p5), [#allocation9], 1024  }
  0x37   : > { %1125 = vsyncadd (%p1259_p5), [#allocation9], 4294966272 }
  0x38   : > { %1127 = dma.done.wait (%p1259_p5), [#allocation12], 512  }
  0x39   : > { %1129 = vsyncadd (%p1259_p5), [#allocation12], 4294966784  ;;  %p835_p0 = scmp.ne.s32.totalorder %s1148_s30, 0 }
  0x3b   : > { %454 = sbr.rel (%p835_p0) target bundleno = 67 (0x43), region = 110 }
  0x40   : > { %vm455_vm0 = vcmask 254976   ;;  %v1166_v2 = vmov 0.0  }
  0x41   : > { %456 = vst.msk [vmem:[#allocation2] sm:$0x3] %vm455_vm0, %v1166_v2 }
  0x42   : > { %457 = vst.msk [vmem:[#allocation3] sm:$0x3] %vm455_vm0, %v1166_v2 }
  0x43 PF: > { %v461_v3 = vld [vmem:[%s401_s15 + $0x8] sm:$0xff]  ;;  %vm463_vm1 = vcmask 64512   ;;  %v460_v4 = vld [vmem:[%s401_s15] sm:$0xff]  ;;  %v1167_v7 = vmov 1.0   ;;  %vm510_vm2 = vcmask 1041409   ;;  %vm514_vm3 = vcmask 254976  }
  0x44   : > { %v459_v5 = vld [vmem:[%s393_s25 + $0x8] sm:$0xff]  ;;  %552 = vmatpush.msra.mxu3 %v461_v3  ;;  %532 = vmatpush.msra.mxu2 %v460_v4  ;;  %v458_v6 = vld [vmem:[%s393_s25] sm:$0xff]  ;;  %p840_p1 = scmp.ne.s32.totalorder %s1148_s30, 1 }
  0x45   : > { %839 = vmatmul.msk.f32.vlgmr.msra.gmra.mxu3 %vm463_vm1, %v1167_v7  ;;  %838 = vmatmul.msk.f32.vlgmr.msra.gmra.mxu2 %vm463_vm1, %v1167_v7 }
  0x46   : > { %502 = vmatpush.msra.mxu1 %v459_v5  ;;  %482 = vmatpush.msra.mxu0 %v458_v6 }
  0x47   : > { %837 = vmatmul.msk.f32.vlgmr.msra.gmra.mxu1 %vm463_vm1, %v1167_v7  ;;  %836 = vmatmul.msk.f32.vlgmr.msra.gmra.mxu0 %vm463_vm1, %v1167_v7 }
  0x48   : > { %v462_v11 = vld [vmem:[#allocation2] sm:$0x3] }
  0x49   : > { %v516_v17 = vld [vmem:[#allocation3] sm:$0x3] }
  0xc4   : > { %v504_v8 = vpop.f32.mrf.mxu1  ;;  %v484_v9 = vpop.f32.mrf.mxu0 }
  0xc5   : > { %v509_v10 = vrot.slane %v504_v8, 7 }
  0xc7   : > { %v511_v12 = vsel %vm510_vm2, %v509_v10, %v484_v9 }
  0xc8   : > { %v554_v13 = vpop.f32.mrf.mxu3  ;;  %v513_v14 = vadd.f32 %v511_v12, %v462_v11  ;;  %v534_v15 = vpop.f32.mrf.mxu2 }
  0xc9   : > { %v559_v16 = vrot.slane %v554_v13, 7 }
  0xca   : > { %515 = vst.msk [vmem:[#allocation2] sm:$0x3] %vm514_vm3, %v513_v14  ;;  %567 = sbr.rel (%p840_p1) target bundleno = 498 (0x1f2), region = 114 }
  0xcb   : > { %v560_v18 = vsel %vm510_vm2, %v559_v16, %v534_v15 }
  0xcc   : > { %v562_v19 = vadd.f32 %v560_v18, %v516_v17 }
  0xce   : > { %563 = vst.msk [vmem:[#allocation3] sm:$0x3] %vm514_vm3, %v562_v19 }
  0xcf   : > { %v632_v20 = vld [vmem:[#allocation11 + $0x18] sm:$0xff]  ;;  %v631_v21 = vld [vmem:[#allocation11 + $0x10] sm:$0xff]  ;;  %v630_v25 = vld [vmem:[#allocation11 + $0x8] sm:$0xff]  ;;  %vm582_vm4 = vcmask 261120   ;;  %vm694_vm5 = vcmask 9216  }
  0xd0   : > { %v581_v22 = vld [vmem:[#allocation10 + $0x18] sm:$0xff]  ;;  %648 = vmatpush.msra.mxu2 %v632_v20  ;;  %v580_v24 = vld [vmem:[#allocation10 + $0x10] sm:$0xff]  ;;  %v579_v30 = vld [vmem:[#allocation10 + $0x8] sm:$0xff] }
  0xd1   : > { %598 = vmatpush.msra.mxu0 %v581_v22  ;;  %v577_v23 = vld [vmem:[#allocation8 + $0x18] sm:$0xff]  ;;  %v576_v26 = vld [vmem:[#allocation8 + $0x10] sm:$0xff]  ;;  %v575_v31 = vld [vmem:[#allocation8 + $0x8] sm:$0xff] }
  0xd2   : > { %621 = vmatpush.msra.mxu1 %v577_v23  ;;  %v568_v27 = vld [vmem:[#allocation2] sm:$0x3]  ;;  %649 = vmatpush.msra.mxu2 %v631_v21  ;;  %v629_v32 = vld [vmem:[#allocation11] sm:$0xff]  ;;  %v666_v38 = vld [vmem:[%s1384_s6 + $0x18] sm:$0xff] }
  0xd3   : > { %599 = vmatpush.msra.mxu0 %v580_v24  ;;  %v569_v28 = vmul.f32 0.0625, %v568_v27  ;;  %v578_v34 = vld [vmem:[#allocation10] sm:$0xff]  ;;  %686 = vmatpush.msra.mxu3 %v666_v38  ;;  %v665_v39 = vld [vmem:[%s1384_s6 + $0x10] sm:$0xff]  ;;  %v944_v45 = vld [vmem:[%s1383_s5] ss:$0 sm:$0xff] }
  0xd4   : > { %622 = vmatpush.msra.mxu1 %v576_v26  ;;  %650 = vmatpush.msra.mxu2 %v630_v25  ;;  %v574_v35 = vld [vmem:[#allocation8] sm:$0xff]  ;;  %v945_v50 = vld [vmem:[%s1385_s7] ss:$0 sm:$0xff] }
  0xd5   : > { %v570_v29 = vld [vmem:[#allocation3] sm:$0x3]  ;;  %600 = vmatpush.msra.mxu0 %v579_v30  ;;  %v664_v40 = vld [vmem:[%s1384_s6 + $0x8] sm:$0xff]  ;;  %687 = vmatpush.msra.mxu3 %v665_v39 }
  0xd6   : > { %v571_v33 = vmul.f32 0.0625, %v570_v29  ;;  %623 = vmatpush.msra.mxu1 %v575_v31  ;;  %651 = vmatpush.msra.mxu2 %v629_v32  ;;  %v663_v41 = vld [vmem:[%s1384_s6] sm:$0xff] }
  0xd7   : > { %601 = vmatpush.msra.mxu0 %v578_v34  ;;  %688 = vmatpush.msra.mxu3 %v664_v40 }
  0xd8   : > { %v572_v36 = vsub.f32 %v569_v28, %v571_v33  ;;  %624 = vmatpush.msra.mxu1 %v574_v35  ;;  %841 = vmatmul.msk.f32.vlgmr.msra.gmra.mxu0 %vm582_vm4, %v571_v33 }
  0xd9   : > { %842 = vmatmul.msk.f32.vlgmr.msra.gmra.mxu1 %vm582_vm4, %v569_v28  ;;  %689 = vmatpush.msra.mxu3 %v663_v41 }
  0xda   : > { %v573_v37 = vand.u32 2147483647, %v572_v36 }
  0xdc   : > { %843 = vmatmul.msk.f32.vlgmr.msra.gmra.mxu2 %vm582_vm4, %v573_v37 }
 0x155   : > { %v603_v42 = vpop.f32.mrf.mxu0 }
 0x156   : > { %v626_v43 = vpop.f32.mrf.mxu1 }
 0x157   : > { %v627_v44 = vadd.f32 %v626_v43, %v603_v42 }
 0x15f   : > { %v653_v46 = vpop.f32.mrf.mxu2 }
 0x160   : > { %v656_v47 = vadd.f32 %v653_v46, %v627_v44 }
 0x162   : > { %v661_v48 = vadd.f32 %v944_v45, %v656_v47 }
 0x164   : > { %946 = vtanh.f32 %v661_v48 }
 0x16a   : > { %v947_v49 = vpop.eup %946 }
 0x16b   : > { %844 = vmatmul.msk.f32.vlgmr.msra.gmra.mxu3 %vm582_vm4, %v947_v49 }
 0x1ee   : > { %v691_v51 = vpop.f32.mrf.mxu3 }
 0x1ef   : > { %v692_v52 = vadd.f32 %v945_v50, %v691_v51 }
 0x1f1   : > { %695 = vst.msk [vmem:[#allocation13] sm:$0x3] %vm694_vm5, %v692_v52 }
 0x1f2 PF: > { %s1399_s23 = sadd.s32 4294967295, %s1156_s10   ;;  %s706_s20 = sshll.u32 %s1386_s8, 4  ;;  %s707_s20 = int_to_ptr.hbm [resolvable:$true] %s706_s20 }
 0x1f3   : > { %p883_p2 = scmp.eq.s32.totalorder %s1399_s23, 1  ;;  %s1168_s25 = smov [#allocation13]  }
 0x1f4   : > { %s704_s26 = sshll.u32 %s1168_s25, 4  ;;  %s705_s26 = int_to_ptr.vmem [resolvable:$true] %s704_s26 }
 0x1f5   : > { %864 = dma.vmem_to_hbm [thread:$0]  (%p883_p2), %s705_s26, 32, %s707_s20, [#allocation7]  }
 0x1f6   : > { %1131 = dma.done.wait (%p883_p2), [#allocation7], 32  }
 0x1f7   : > { %1133 = vsyncadd (%p883_p2), [#allocation7], 4294967264 }
 0x1f8 PF: > { %s24_s10 = sadd.s32 1, %s1156_s10   ;;  %s1400_s15 = sld [smem:[#allocation18_spill]] }
 0x1f9   : > { %p21_p3 = scmp.ge.s32.totalorder %s24_s10, 4   ;;  %s1401_s27 = smov %s1140_s28 }
 0x1fa   : > { %s1402_s28 = smov %s1144_s29  ;;  %s1403_s29 = smov %s1272_s18 }
 0x1fb   : > { %s1404_s30 = smov %s1152_s9  ;;  %23 = sbr.rel (!%p21_p3) target bundleno = 10 (0xa), region = 156 }
 0x1fe   : > { %s1405_s9 = smov %s1400_s15 }
 0x200   :  { %720 = vsyncpa [#allocation6], 1 }
 0x201   :  { %722 = vsyncpa [#allocation6 + $0x1], 1 }
 0x202   :  { %723 = vsyncpa [#allocation9], 1 }
 0x203   :  { %724 = vsyncpa [#allocation12], 1 }
 0x204   :  { %725 = vsyncpa [#allocation7], 1 }
 0x205   :  { %727 = vsyncpa [#allocation7 + $0x1], 1 }

</bundles_post_ra>
